<compile_context>
chip_gen: v5e
topology: v5e:2x2
jax: 0.10.0
libtpu: 0.0.40
codegen_flags: <defaults>
</compile_context>

<pallas_src>
import jax
import jax.numpy as jnp
from jax.experimental import pallas as pl
from jax.experimental.pallas import tpu as pltpu

# Small synthetic ModelArgs-consistent shapes.
VOCAB = 512   # tgt_vocab_size
D = 32        # embeddings_dims
B, T = 2, 8   # batch, block_size


# ----------------------------- Pallas kernel --------------------------------

def embedding_kernel(ids_ref, table_ref, out_ref):
    """ids_ref: SMEM (N,) int32, table_ref: VMEM (V, D) f32, out_ref: (N, D)."""
    n = out_ref.shape[0]
    v = table_ref.shape[0]
    # N is tiny (16): fully unrolled scalar-indexed row copies.
    for i in range(n):
        idx = jnp.clip(ids_ref[i], 0, v - 1)           # scalar, no OOB VMEM read
        out_ref[pl.ds(i, 1), :] = table_ref[pl.ds(idx, 1), :]


# ----------------------------- wrapper ---------------------------------------

def tgt_text_embeddings(ids, table):
    """ids: (B, T) int token ids, table: (V, D) float32 -> (B, T, D)."""
    b, t = ids.shape
    v, d = table.shape
    n = b * t
    ids_flat = ids.reshape(n).astype(jnp.int32)

    out = pl.pallas_call(
        embedding_kernel,
        out_shape=jax.ShapeDtypeStruct((n, d), table.dtype),
        in_specs=[
            # Token ids are addresses, not vector data -> SMEM.
            pl.BlockSpec(memory_space=pltpu.MemorySpace.SMEM),
            # Embedding table resident in VMEM (512 x 32 f32 = 64 KiB).
            pl.BlockSpec((v, d), lambda: (0, 0)),
        ],
        out_specs=pl.BlockSpec((n, d), lambda: (0, 0)),
        cost_estimate=pl.CostEstimate(
            flops=0,
            transcendentals=0,
            bytes_accessed=v * d * 4 + n * (4 + d * 4),
        ),
    )(ids_flat, table)

    return out.reshape(b, t, d)


# ----------------------------- pure-JAX reference ---------------------------

def tgt_text_embeddings_reference(ids, table):
    return jnp.take(table, ids, axis=0)          # == table[ids]


# ----------------------------- main ------------------------------------------

if __name__ == "__main__":
    root = jax.random.PRNGKey(0)
    k_table, k_ids = jax.random.split(root)

    # nn.Embedding default init: weight ~ N(0, 1).
    table = jax.random.normal(k_table, (VOCAB, D), jnp.float32)
    ids = jax.random.randint(k_ids, (B, T), 0, VOCAB, dtype=jnp.int32)

    out = jax.jit(tgt_text_embeddings)(ids, table)
    out = jax.block_until_ready(out)

    ref = tgt_text_embeddings_reference(ids, table)

    assert out.shape == (B, T, D)
    assert bool(jnp.all(jnp.isfinite(out)))
    # Pure row copy -> exact match expected.
    assert bool(jnp.array_equal(out, ref)), (
        "max abs err = %f" % float(jnp.max(jnp.abs(out - ref))))

    print("KERNEL_OK")
</pallas_src>

<mosaic_0001>
module attributes {stable_mosaic.version = 11 : i64} {
  func.func @embedding_kernel(%arg0: memref<16xi32, #tpu.memory_space<smem>>, %arg1: memref<512x32xf32, #tpu.memory_space<vmem>>, %arg2: memref<16x32xf32, #tpu.memory_space<vmem>>) attributes {dimension_semantics = [], scalar_prefetch = 0 : i64, scratch_operands = 0 : i64, tpu.core_type = #tpu.core_type<tc>} {
    %c0 = arith.constant 0 : index
    %0 = memref.load %arg0[%c0] : memref<16xi32, #tpu.memory_space<smem>>
    %c0_i32 = arith.constant 0 : i32
    %c511_i32 = arith.constant 511 : i32
    %1 = arith.maxsi %c0_i32, %0 : i32
    %2 = arith.minsi %c511_i32, %1 : i32
    %3 = arith.index_cast %2 : i32 to index
    %c0_0 = arith.constant 0 : index
    %4 = vector.load %arg1[%3, %c0_0] : memref<512x32xf32, #tpu.memory_space<vmem>>, vector<1x32xf32>
    %c0_1 = arith.constant 0 : index
    %c0_2 = arith.constant 0 : index
    %5 = vector.load %arg2[%c0_1, %c0_2] : memref<16x32xf32, #tpu.memory_space<vmem>>, vector<1x32xf32>
    tpu.vector_store %arg2[%c0_1, %c0_2], %4 {strides = array<i32>} : memref<16x32xf32, #tpu.memory_space<vmem>>, vector<1x32xf32>,
    %c1 = arith.constant 1 : index
    %6 = memref.load %arg0[%c1] : memref<16xi32, #tpu.memory_space<smem>>
    %c0_i32_3 = arith.constant 0 : i32
    %c511_i32_4 = arith.constant 511 : i32
    %7 = arith.maxsi %c0_i32_3, %6 : i32
    %8 = arith.minsi %c511_i32_4, %7 : i32
    %9 = arith.index_cast %8 : i32 to index
    %c0_5 = arith.constant 0 : index
    %10 = vector.load %arg1[%9, %c0_5] : memref<512x32xf32, #tpu.memory_space<vmem>>, vector<1x32xf32>
    %c1_6 = arith.constant 1 : index
    %c0_7 = arith.constant 0 : index
    %11 = vector.load %arg2[%c1_6, %c0_7] : memref<16x32xf32, #tpu.memory_space<vmem>>, vector<1x32xf32>
    tpu.vector_store %arg2[%c1_6, %c0_7], %10 {strides = array<i32>} : memref<16x32xf32, #tpu.memory_space<vmem>>, vector<1x32xf32>,
    %c2 = arith.constant 2 : index
    %12 = memref.load %arg0[%c2] : memref<16xi32, #tpu.memory_space<smem>>
    %c0_i32_8 = arith.constant 0 : i32
    %c511_i32_9 = arith.constant 511 : i32
    %13 = arith.maxsi %c0_i32_8, %12 : i32
    %14 = arith.minsi %c511_i32_9, %13 : i32
    %15 = arith.index_cast %14 : i32 to index
    %c0_10 = arith.constant 0 : index
    %16 = vector.load %arg1[%15, %c0_10] : memref<512x32xf32, #tpu.memory_space<vmem>>, vector<1x32xf32>
    %c2_11 = arith.constant 2 : index
    %c0_12 = arith.constant 0 : index
    %17 = vector.load %arg2[%c2_11, %c0_12] : memref<16x32xf32, #tpu.memory_space<vmem>>, vector<1x32xf32>
    tpu.vector_store %arg2[%c2_11, %c0_12], %16 {strides = array<i32>} : memref<16x32xf32, #tpu.memory_space<vmem>>, vector<1x32xf32>,
    %c3 = arith.constant 3 : index
    %18 = memref.load %arg0[%c3] : memref<16xi32, #tpu.memory_space<smem>>
    %c0_i32_13 = arith.constant 0 : i32
    %c511_i32_14 = arith.constant 511 : i32
    %19 = arith.maxsi %c0_i32_13, %18 : i32
    %20 = arith.minsi %c511_i32_14, %19 : i32
    %21 = arith.index_cast %20 : i32 to index
    %c0_15 = arith.constant 0 : index
    %22 = vector.load %arg1[%21, %c0_15] : memref<512x32xf32, #tpu.memory_space<vmem>>, vector<1x32xf32>
    %c3_16 = arith.constant 3 : index
    %c0_17 = arith.constant 0 : index
    %23 = vector.load %arg2[%c3_16, %c0_17] : memref<16x32xf32, #tpu.memory_space<vmem>>, vector<1x32xf32>
    tpu.vector_store %arg2[%c3_16, %c0_17], %22 {strides = array<i32>} : memref<16x32xf32, #tpu.memory_space<vmem>>, vector<1x32xf32>,
    %c4 = arith.constant 4 : index
    %24 = memref.load %arg0[%c4] : memref<16xi32, #tpu.memory_space<smem>>
    %c0_i32_18 = arith.constant 0 : i32
    %c511_i32_19 = arith.constant 511 : i32
    %25 = arith.maxsi %c0_i32_18, %24 : i32
    %26 = arith.minsi %c511_i32_19, %25 : i32
    %27 = arith.index_cast %26 : i32 to index
    %c0_20 = arith.constant 0 : index
    %28 = vector.load %arg1[%27, %c0_20] : memref<512x32xf32, #tpu.memory_space<vmem>>, vector<1x32xf32>
    %c4_21 = arith.constant 4 : index
    %c0_22 = arith.constant 0 : index
    %29 = vector.load %arg2[%c4_21, %c0_22] : memref<16x32xf32, #tpu.memory_space<vmem>>, vector<1x32xf32>
    tpu.vector_store %arg2[%c4_21, %c0_22], %28 {strides = array<i32>} : memref<16x32xf32, #tpu.memory_space<vmem>>, vector<1x32xf32>,
    %c5 = arith.constant 5 : index
    %30 = memref.load %arg0[%c5] : memref<16xi32, #tpu.memory_space<smem>>
    %c0_i32_23 = arith.constant 0 : i32
    %c511_i32_24 = arith.constant 511 : i32
    %31 = arith.maxsi %c0_i32_23, %30 : i32
    %32 = arith.minsi %c511_i32_24, %31 : i32
    %33 = arith.index_cast %32 : i32 to index
    %c0_25 = arith.constant 0 : index
    %34 = vector.load %arg1[%33, %c0_25] : memref<512x32xf32, #tpu.memory_space<vmem>>, vector<1x32xf32>
    %c5_26 = arith.constant 5 : index
    %c0_27 = arith.constant 0 : index
    %35 = vector.load %arg2[%c5_26, %c0_27] : memref<16x32xf32, #tpu.memory_space<vmem>>, vector<1x32xf32>
    tpu.vector_store %arg2[%c5_26, %c0_27], %34 {strides = array<i32>} : memref<16x32xf32, #tpu.memory_space<vmem>>, vector<1x32xf32>,
    %c6 = arith.constant 6 : index
    %36 = memref.load %arg0[%c6] : memref<16xi32, #tpu.memory_space<smem>>
    %c0_i32_28 = arith.constant 0 : i32
    %c511_i32_29 = arith.constant 511 : i32
    %37 = arith.maxsi %c0_i32_28, %36 : i32
    %38 = arith.minsi %c511_i32_29, %37 : i32
    %39 = arith.index_cast %38 : i32 to index
    %c0_30 = arith.constant 0 : index
    %40 = vector.load %arg1[%39, %c0_30] : memref<512x32xf32, #tpu.memory_space<vmem>>, vector<1x32xf32>
    %c6_31 = arith.constant 6 : index
    %c0_32 = arith.constant 0 : index
    %41 = vector.load %arg2[%c6_31, %c0_32] : memref<16x32xf32, #tpu.memory_space<vmem>>, vector<1x32xf32>
    tpu.vector_store %arg2[%c6_31, %c0_32], %40 {strides = array<i32>} : memref<16x32xf32, #tpu.memory_space<vmem>>, vector<1x32xf32>,
    %c7 = arith.constant 7 : index
    %42 = memref.load %arg0[%c7] : memref<16xi32, #tpu.memory_space<smem>>
    %c0_i32_33 = arith.constant 0 : i32
    %c511_i32_34 = arith.constant 511 : i32
    %43 = arith.maxsi %c0_i32_33, %42 : i32
    %44 = arith.minsi %c511_i32_34, %43 : i32
    %45 = arith.index_cast %44 : i32 to index
    %c0_35 = arith.constant 0 : index
    %46 = vector.load %arg1[%45, %c0_35] : memref<512x32xf32, #tpu.memory_space<vmem>>, vector<1x32xf32>
    %c7_36 = arith.constant 7 : index
    %c0_37 = arith.constant 0 : index
    %47 = vector.load %arg2[%c7_36, %c0_37] : memref<16x32xf32, #tpu.memory_space<vmem>>, vector<1x32xf32>
    tpu.vector_store %arg2[%c7_36, %c0_37], %46 {strides = array<i32>} : memref<16x32xf32, #tpu.memory_space<vmem>>, vector<1x32xf32>,
    %c8 = arith.constant 8 : index
    %48 = memref.load %arg0[%c8] : memref<16xi32, #tpu.memory_space<smem>>
    %c0_i32_38 = arith.constant 0 : i32
    %c511_i32_39 = arith.constant 511 : i32
    %49 = arith.maxsi %c0_i32_38, %48 : i32
    %50 = arith.minsi %c511_i32_39, %49 : i32
    %51 = arith.index_cast %50 : i32 to index
    %c0_40 = arith.constant 0 : index
    %52 = vector.load %arg1[%51, %c0_40] : memref<512x32xf32, #tpu.memory_space<vmem>>, vector<1x32xf32>
    %c8_41 = arith.constant 8 : index
    %c0_42 = arith.constant 0 : index
    %53 = vector.load %arg2[%c8_41, %c0_42] : memref<16x32xf32, #tpu.memory_space<vmem>>, vector<1x32xf32>
    tpu.vector_store %arg2[%c8_41, %c0_42], %52 {strides = array<i32>} : memref<16x32xf32, #tpu.memory_space<vmem>>, vector<1x32xf32>,
    %c9 = arith.constant 9 : index
    %54 = memref.load %arg0[%c9] : memref<16xi32, #tpu.memory_space<smem>>
    %c0_i32_43 = arith.constant 0 : i32
    %c511_i32_44 = arith.constant 511 : i32
    %55 = arith.maxsi %c0_i32_43, %54 : i32
    %56 = arith.minsi %c511_i32_44, %55 : i32
    %57 = arith.index_cast %56 : i32 to index
    %c0_45 = arith.constant 0 : index
    %58 = vector.load %arg1[%57, %c0_45] : memref<512x32xf32, #tpu.memory_space<vmem>>, vector<1x32xf32>
    %c9_46 = arith.constant 9 : index
    %c0_47 = arith.constant 0 : index
    %59 = vector.load %arg2[%c9_46, %c0_47] : memref<16x32xf32, #tpu.memory_space<vmem>>, vector<1x32xf32>
    tpu.vector_store %arg2[%c9_46, %c0_47], %58 {strides = array<i32>} : memref<16x32xf32, #tpu.memory_space<vmem>>, vector<1x32xf32>,
    %c10 = arith.constant 10 : index
    %60 = memref.load %arg0[%c10] : memref<16xi32, #tpu.memory_space<smem>>
    %c0_i32_48 = arith.constant 0 : i32
    %c511_i32_49 = arith.constant 511 : i32
    %61 = arith.maxsi %c0_i32_48, %60 : i32
    %62 = arith.minsi %c511_i32_49, %61 : i32
    %63 = arith.index_cast %62 : i32 to index
    %c0_50 = arith.constant 0 : index
    %64 = vector.load %arg1[%63, %c0_50] : memref<512x32xf32, #tpu.memory_space<vmem>>, vector<1x32xf32>
    %c10_51 = arith.constant 10 : index
    %c0_52 = arith.constant 0 : index
    %65 = vector.load %arg2[%c10_51, %c0_52] : memref<16x32xf32, #tpu.memory_space<vmem>>, vector<1x32xf32>
    tpu.vector_store %arg2[%c10_51, %c0_52], %64 {strides = array<i32>} : memref<16x32xf32, #tpu.memory_space<vmem>>, vector<1x32xf32>,
    %c11 = arith.constant 11 : index
    %66 = memref.load %arg0[%c11] : memref<16xi32, #tpu.memory_space<smem>>
    %c0_i32_53 = arith.constant 0 : i32
    %c511_i32_54 = arith.constant 511 : i32
    %67 = arith.maxsi %c0_i32_53, %66 : i32
    %68 = arith.minsi %c511_i32_54, %67 : i32
    %69 = arith.index_cast %68 : i32 to index
    %c0_55 = arith.constant 0 : index
    %70 = vector.load %arg1[%69, %c0_55] : memref<512x32xf32, #tpu.memory_space<vmem>>, vector<1x32xf32>
    %c11_56 = arith.constant 11 : index
    %c0_57 = arith.constant 0 : index
    %71 = vector.load %arg2[%c11_56, %c0_57] : memref<16x32xf32, #tpu.memory_space<vmem>>, vector<1x32xf32>
    tpu.vector_store %arg2[%c11_56, %c0_57], %70 {strides = array<i32>} : memref<16x32xf32, #tpu.memory_space<vmem>>, vector<1x32xf32>,
    %c12 = arith.constant 12 : index
    %72 = memref.load %arg0[%c12] : memref<16xi32, #tpu.memory_space<smem>>
    %c0_i32_58 = arith.constant 0 : i32
    %c511_i32_59 = arith.constant 511 : i32
    %73 = arith.maxsi %c0_i32_58, %72 : i32
    %74 = arith.minsi %c511_i32_59, %73 : i32
    %75 = arith.index_cast %74 : i32 to index
    %c0_60 = arith.constant 0 : index
    %76 = vector.load %arg1[%75, %c0_60] : memref<512x32xf32, #tpu.memory_space<vmem>>, vector<1x32xf32>
    %c12_61 = arith.constant 12 : index
    %c0_62 = arith.constant 0 : index
    %77 = vector.load %arg2[%c12_61, %c0_62] : memref<16x32xf32, #tpu.memory_space<vmem>>, vector<1x32xf32>
    tpu.vector_store %arg2[%c12_61, %c0_62], %76 {strides = array<i32>} : memref<16x32xf32, #tpu.memory_space<vmem>>, vector<1x32xf32>,
    %c13 = arith.constant 13 : index
    %78 = memref.load %arg0[%c13] : memref<16xi32, #tpu.memory_space<smem>>
    %c0_i32_63 = arith.constant 0 : i32
    %c511_i32_64 = arith.constant 511 : i32
    %79 = arith.maxsi %c0_i32_63, %78 : i32
    %80 = arith.minsi %c511_i32_64, %79 : i32
    %81 = arith.index_cast %80 : i32 to index
    %c0_65 = arith.constant 0 : index
    %82 = vector.load %arg1[%81, %c0_65] : memref<512x32xf32, #tpu.memory_space<vmem>>, vector<1x32xf32>
    %c13_66 = arith.constant 13 : index
    %c0_67 = arith.constant 0 : index
    %83 = vector.load %arg2[%c13_66, %c0_67] : memref<16x32xf32, #tpu.memory_space<vmem>>, vector<1x32xf32>
    tpu.vector_store %arg2[%c13_66, %c0_67], %82 {strides = array<i32>} : memref<16x32xf32, #tpu.memory_space<vmem>>, vector<1x32xf32>,
    %c14 = arith.constant 14 : index
    %84 = memref.load %arg0[%c14] : memref<16xi32, #tpu.memory_space<smem>>
    %c0_i32_68 = arith.constant 0 : i32
    %c511_i32_69 = arith.constant 511 : i32
    %85 = arith.maxsi %c0_i32_68, %84 : i32
    %86 = arith.minsi %c511_i32_69, %85 : i32
    %87 = arith.index_cast %86 : i32 to index
    %c0_70 = arith.constant 0 : index
    %88 = vector.load %arg1[%87, %c0_70] : memref<512x32xf32, #tpu.memory_space<vmem>>, vector<1x32xf32>
    %c14_71 = arith.constant 14 : index
    %c0_72 = arith.constant 0 : index
    %89 = vector.load %arg2[%c14_71, %c0_72] : memref<16x32xf32, #tpu.memory_space<vmem>>, vector<1x32xf32>
    tpu.vector_store %arg2[%c14_71, %c0_72], %88 {strides = array<i32>} : memref<16x32xf32, #tpu.memory_space<vmem>>, vector<1x32xf32>,
    %c15 = arith.constant 15 : index
    %90 = memref.load %arg0[%c15] : memref<16xi32, #tpu.memory_space<smem>>
    %c0_i32_73 = arith.constant 0 : i32
    %c511_i32_74 = arith.constant 511 : i32
    %91 = arith.maxsi %c0_i32_73, %90 : i32
    %92 = arith.minsi %c511_i32_74, %91 : i32
    %93 = arith.index_cast %92 : i32 to index
    %c0_75 = arith.constant 0 : index
    %94 = vector.load %arg1[%93, %c0_75] : memref<512x32xf32, #tpu.memory_space<vmem>>, vector<1x32xf32>
    %c15_76 = arith.constant 15 : index
    %c0_77 = arith.constant 0 : index
    %95 = vector.load %arg2[%c15_76, %c0_77] : memref<16x32xf32, #tpu.memory_space<vmem>>, vector<1x32xf32>
    tpu.vector_store %arg2[%c15_76, %c0_77], %94 {strides = array<i32>} : memref<16x32xf32, #tpu.memory_space<vmem>>, vector<1x32xf32>,
    return
  }
}

</mosaic_0001>

<bundles_post_ra>
// kernel: tgt_text_embeddings.1
= control target key start
LH: loop header
LB: loop body
LE: loop exit
PB: predicated region body
PF: predicated region fallthrough
CT: control target
= control target key end

     0   :  { %7 = vsyncpa [#allocation4], 0  ;;  %s472_s0 = inlined_call_operand.vmem [shape: s32[16], index: 0, kind: input, shape index: {}]   ;;  %s473_s1 = inlined_call_operand.vmem [shape: f32[512,32], index: 1, kind: input, shape index: {}]   ;;  %s474_s2 = inlined_call_operand.hbm [shape: f32[16,32], index: 2, kind: output, shape index: {}]  }
   0x1   :  { %8 = vsyncpa [#allocation3], 0  ;;  %s14_s11 = sshll.u32 %s472_s0, 4  ;;  %s360_s12 = smov [#allocation2]   ;;  %s15_s11 = int_to_ptr.vmem [resolvable:$true] %s14_s11 }
   0x2   :  { %17 = dma.vmem_to_smem %s15_s11, 16, %s360_s12, [#allocation4]  }
   0x3   :  { %356 = dma.done.wait [#allocation4], 16  }
   0x4   :  { %357 = vsyncadd [#allocation4], 4294967280 }
   0x5   :  { %24 = sfence }
   0x6   :  { %s25_s13 = sld [smem:[#allocation2]]  ;;  %vm32_vm0 = vcmask 253952   ;;  %s361_s9 = smov [#allocation5]  }
   0x7   :  { %s194_s14 = sld [smem:[#allocation2 + $0x1]] }
   0x8   :  { %s200_s15 = sld [smem:[#allocation2 + $0x2]] }
   0x9   :  { %s206_s16 = sld [smem:[#allocation2 + $0x3]] }
   0xa   :  { %s382_s17 = sld [smem:[#allocation2 + $0x4]] }
   0xb   :  { %s384_s18 = sld [smem:[#allocation2 + $0x5]] }
   0xc   :  { %p26_p0 = scmp.gt.s32.totalorder %s25_s13, 0  ;;  %p189_p1 = scmp.lt.s32.totalorder %s25_s13, 511 }
   0xd   :  { %p35_p2 = scmp.gt.s32.totalorder %s194_s14, 0  ;;  %p195_p3 = scmp.lt.s32.totalorder %s194_s14, 511 }
   0xe   :  { %s476_s13 = smov (!%p26_p0, %s25_s13), 0  ;;  %p43_p4 = scmp.gt.s32.totalorder %s200_s15, 0 }
   0xf   :  { %s478_s14 = smov (!%p35_p2, %s194_s14), 0  ;;  %s480_s13 = smov (!%p189_p1, %s476_s13), 511 }
  0x10   :  { %s482_s14 = smov (!%p195_p3, %s478_s14), 511  ;;  %s30_s20 = scalar_lea.vmem %s473_s1, %s480_s13 }
  0x11   :  { %v31_v0 = vld [vmem:[%s30_s20] sm:$0x1]  ;;  %s39_s23 = scalar_lea.vmem %s473_s1, %s482_s14  ;;  %p201_p5 = scmp.lt.s32.totalorder %s200_s15, 511 }
  0x12   :  { %33 = vst.msk [vmem:[#allocation5] sm:$0x1] %vm32_vm0, %v31_v0  ;;  %v40_v1 = vld [vmem:[%s39_s23] sm:$0x1]  ;;  %s484_s15 = smov (!%p43_p4, %s200_s15), 0  ;;  %p51_p6 = scmp.gt.s32.totalorder %s206_s16, 0 }
  0x13   :  { %41 = vst.msk [vmem:[#allocation5 + $0x1] sm:$0x1] %vm32_vm0, %v40_v1  ;;  %p207_p7 = scmp.lt.s32.totalorder %s206_s16, 511  ;;  %s486_s15 = smov (!%p201_p5, %s484_s15), 511 }
  0x14   :  { %s488_s16 = smov (!%p51_p6, %s206_s16), 0  ;;  %s47_s26 = scalar_lea.vmem %s473_s1, %s486_s15 }
  0x15   :  { %p59_p8 = scmp.gt.s32.totalorder %s382_s17, 0  ;;  %v48_v2 = vld [vmem:[%s47_s26] sm:$0x1]  ;;  %s490_s16 = smov (!%p207_p7, %s488_s16), 511 }
  0x16   :  { %49 = vst.msk [vmem:[#allocation5 + $0x2] sm:$0x1] %vm32_vm0, %v48_v2  ;;  %s55_s30 = scalar_lea.vmem %s473_s1, %s490_s16  ;;  %p213_p9 = scmp.lt.s32.totalorder %s382_s17, 511 }
  0x17   :  { %s60_s27 = scalar_select %p59_p8, %s382_s17, 0  ;;  %v56_v3 = vld [vmem:[%s55_s30] sm:$0x1] }
  0x18   :  { %p67_p10 = scmp.gt.s32.totalorder %s384_s18, 0  ;;  %p219_p11 = scmp.lt.s32.totalorder %s384_s18, 511  ;;  %57 = vst.msk [vmem:[#allocation5 + $0x3] sm:$0x1] %vm32_vm0, %v56_v3 }
  0x19   :  { %s492_s27 = smov (!%p213_p9, %s60_s27), 511  ;;  %s224_s6 = sld [smem:[#allocation2 + $0x6]] }
  0x1a   :  { %s494_s18 = smov (!%p67_p10, %s384_s18), 0  ;;  %s63_s5 = scalar_lea.vmem %s473_s1, %s492_s27 }
  0x1b   :  { %v64_v4 = vld [vmem:[%s63_s5] sm:$0x1]  ;;  %s496_s18 = smov (!%p219_p11, %s494_s18), 511  ;;  %s230_s7 = sld [smem:[#allocation2 + $0x7]] }
  0x1c   :  { %65 = vst.msk [vmem:[#allocation5 + $0x4] sm:$0x1] %vm32_vm0, %v64_v4  ;;  %s71_s10 = scalar_lea.vmem %s473_s1, %s496_s18  ;;  %s236_s11 = sld [smem:[#allocation2 + $0x8]] }
  0x1d   :  { %v72_v5 = vld [vmem:[%s71_s10] sm:$0x1]  ;;  %s242_s12 = sld [smem:[#allocation2 + $0x9]]  ;;  %s450_s10 = sshll.u32 %s361_s9, 4  ;;  %s159_s10 = int_to_ptr.vmem [resolvable:$true] %s450_s10 }
  0x1e   :  { %73 = vst.msk [vmem:[#allocation5 + $0x5] sm:$0x1] %vm32_vm0, %v72_v5  ;;  %s416_s13 = sld [smem:[#allocation2 + $0xa]]  ;;  %s160_s15 = sshll.u32 %s474_s2, 4  ;;  %s161_s15 = int_to_ptr.hbm [resolvable:$true] %s160_s15 }
  0x1f   :  { %p75_p12 = scmp.gt.s32.totalorder %s224_s6, 0  ;;  %p225_p13 = scmp.lt.s32.totalorder %s224_s6, 511 }
  0x20   :  { %s418_s14 = sld [smem:[#allocation2 + $0xb]]  ;;  %s362_s26 = smov 128  }
  0x21   :  { %s498_s6 = smov (!%p75_p12, %s224_s6), 0  ;;  %p83_p0 = scmp.gt.s32.totalorder %s230_s7, 0 }
  0x22   :  { %p231_p1 = scmp.lt.s32.totalorder %s230_s7, 511  ;;  %s500_s6 = smov (!%p225_p13, %s498_s6), 511 }
  0x23   :  { %s502_s7 = smov (!%p83_p0, %s230_s7), 0  ;;  %s79_s17 = scalar_lea.vmem %s473_s1, %s500_s6 }
  0x24   :  { %p91_p2 = scmp.gt.s32.totalorder %s236_s11, 0  ;;  %v80_v6 = vld [vmem:[%s79_s17] sm:$0x1]  ;;  %s504_s7 = smov (!%p231_p1, %s502_s7), 511 }
  0x25   :  { %81 = vst.msk [vmem:[#allocation5 + $0x6] sm:$0x1] %vm32_vm0, %v80_v6  ;;  %s87_s20 = scalar_lea.vmem %s473_s1, %s504_s7  ;;  %p237_p3 = scmp.lt.s32.totalorder %s236_s11, 511 }
  0x26   :  { %s92_s18 = scalar_select %p91_p2, %s236_s11, 0  ;;  %v88_v7 = vld [vmem:[%s87_s20] sm:$0x1] }
  0x27   :  { %p99_p4 = scmp.gt.s32.totalorder %s242_s12, 0  ;;  %p243_p5 = scmp.lt.s32.totalorder %s242_s12, 511  ;;  %89 = vst.msk [vmem:[#allocation5 + $0x7] sm:$0x1] %vm32_vm0, %v88_v7 }
  0x28   :  { %s506_s18 = smov (!%p237_p3, %s92_s18), 511  ;;  %p107_p6 = scmp.gt.s32.totalorder %s416_s13, 0 }
  0x29   :  { %s508_s12 = smov (!%p99_p4, %s242_s12), 0  ;;  %s95_s23 = scalar_lea.vmem %s473_s1, %s506_s18 }
  0x2a   :  { %v96_v8 = vld [vmem:[%s95_s23] sm:$0x1]  ;;  %s510_s12 = smov (!%p243_p5, %s508_s12), 511  ;;  %p249_p7 = scmp.lt.s32.totalorder %s416_s13, 511 }
  0x2b   :  { %97 = vst.msk [vmem:[#allocation5 + $0x8] sm:$0x1] %vm32_vm0, %v96_v8  ;;  %s108_s24 = scalar_select %p107_p6, %s416_s13, 0 }
  0x2c   :  { %s103_s27 = scalar_lea.vmem %s473_s1, %s510_s12  ;;  %p115_p8 = scmp.gt.s32.totalorder %s418_s14, 0 }
  0x2d   :  { %v104_v9 = vld [vmem:[%s103_s27] sm:$0x1]  ;;  %p255_p9 = scmp.lt.s32.totalorder %s418_s14, 511  ;;  %s512_s24 = smov (!%p249_p7, %s108_s24), 511 }
  0x2e   :  { %105 = vst.msk [vmem:[#allocation5 + $0x9] sm:$0x1] %vm32_vm0, %v104_v9  ;;  %s514_s14 = smov (!%p115_p8, %s418_s14), 0  ;;  %s111_s30 = scalar_lea.vmem %s473_s1, %s512_s24 }
  0x2f   :  { %s260_s3 = sld [smem:[#allocation2 + $0xc]]  ;;  %v112_v10 = vld [vmem:[%s111_s30] sm:$0x1]  ;;  %s516_s14 = smov (!%p255_p9, %s514_s14), 511 }
  0x30   :  { %113 = vst.msk [vmem:[#allocation5 + $0xa] sm:$0x1] %vm32_vm0, %v112_v10  ;;  %s266_s4 = sld [smem:[#allocation2 + $0xd]]  ;;  %s119_s7 = scalar_lea.vmem %s473_s1, %s516_s14 }
  0x31   :  { %v120_v11 = vld [vmem:[%s119_s7] sm:$0x1]  ;;  %s272_s8 = sld [smem:[#allocation2 + $0xe]]  ;;  %s363_s27 = smov 8  }
  0x32   :  { %121 = vst.msk [vmem:[#allocation5 + $0xb] sm:$0x1] %vm32_vm0, %v120_v11  ;;  %s278_s11 = sld [smem:[#allocation2 + $0xf]] }
  0x35   :  { %p123_p10 = scmp.gt.s32.totalorder %s260_s3, 0  ;;  %p261_p11 = scmp.lt.s32.totalorder %s260_s3, 511 }
  0x36   :  { %p131_p12 = scmp.gt.s32.totalorder %s266_s4, 0  ;;  %p267_p13 = scmp.lt.s32.totalorder %s266_s4, 511 }
  0x37   :  { %s518_s3 = smov (!%p123_p10, %s260_s3), 0  ;;  %p139_p0 = scmp.gt.s32.totalorder %s272_s8, 0 }
  0x38   :  { %s520_s3 = smov (!%p261_p11, %s518_s3), 511  ;;  %s522_s4 = smov (!%p131_p12, %s266_s4), 0 }
  0x39   :  { %s127_s17 = scalar_lea.vmem %s473_s1, %s520_s3  ;;  %s524_s4 = smov (!%p267_p13, %s522_s4), 511 }
  0x3a   :  { %v128_v12 = vld [vmem:[%s127_s17] sm:$0x1]  ;;  %s140_s18 = scalar_select %p139_p0, %s272_s8, 0 }
  0x3b   :  { %129 = vst.msk [vmem:[#allocation5 + $0xc] sm:$0x1] %vm32_vm0, %v128_v12  ;;  %s135_s2 = scalar_lea.vmem %s473_s1, %s524_s4  ;;  %p273_p1 = scmp.lt.s32.totalorder %s272_s8, 511 }
  0x3c   :  { %v136_v13 = vld [vmem:[%s135_s2] sm:$0x1]  ;;  %p147_p2 = scmp.gt.s32.totalorder %s278_s11, 0  ;;  %p279_p3 = scmp.lt.s32.totalorder %s278_s11, 511 }
  0x3d   :  { %137 = vst.msk [vmem:[#allocation5 + $0xd] sm:$0x1] %vm32_vm0, %v136_v13  ;;  %s526_s18 = smov (!%p273_p1, %s140_s18), 511 }
  0x3e   :  { %s528_s11 = smov (!%p147_p2, %s278_s11), 0  ;;  %s143_s22 = scalar_lea.vmem %s473_s1, %s526_s18 }
  0x3f   :  { %v144_v14 = vld [vmem:[%s143_s22] sm:$0x1]  ;;  %s530_s11 = smov (!%p279_p3, %s528_s11), 511 }
  0x40   :  { %145 = vst.msk [vmem:[#allocation5 + $0xe] sm:$0x1] %vm32_vm0, %v144_v14  ;;  %s151_s25 = scalar_lea.vmem %s473_s1, %s530_s11 }
  0x41   :  { %v152_v15 = vld [vmem:[%s151_s25] sm:$0x1] }
  0x42   :  { %153 = vst.msk [vmem:[#allocation5 + $0xf] sm:$0x1] %vm32_vm0, %v152_v15 }
  0x43   :  { %166 = dma.vmem_to_hbm [thread:$0]  %s159_s10, 256, %s161_s15, [#allocation3], %s362_s26, %s362_s26, %s363_s27  }
  0x44   :  { %358 = dma.done.wait [#allocation3], 256  }
  0x45   :  { %359 = vsyncadd [#allocation3], 4294967040 }
  0x46   :  { %171 = vsyncpa [#allocation3], 1 }
  0x47   :  { %172 = vsyncpa [#allocation4], 1 }

</bundles_post_ra>
